<compile_context>
chip_gen: v6e
topology: v6e:2x2x1
jax: 0.10.0
libtpu: 0.0.40
codegen_flags: <defaults>
</compile_context>

<pallas_src>
import functools
import math

import jax
import jax.numpy as jnp
from jax.experimental import pallas as pl
from jax.experimental.pallas import tpu as pltpu


def _head_kernel(x_ref, wkq_ref, wv_ref, ev_ref, wol_ref, bl_ref, kmask_ref,
                 out_ref, *, approx_recip):
    """One tile of tb batch elements: fused cross-attention + classification."""
    rows = x_ref.shape[0]                 # tb * seq_pad
    tb = out_ref.shape[0]
    seq = rows // tb
    inner = wv_ref.shape[1]

    x2 = x_ref[...]                                                        # (rows, D)

    # All-head attention scores in ONE matmul: the scaled, block-diagonal output
    # query is folded into Wk in the wrapper -> wkq is (D, H).
    s = jnp.dot(x2, wkq_ref[...], preferred_element_type=jnp.float32)      # (rows, H)
    s3 = s.reshape(tb, seq, s.shape[1]) + kmask_ref[...]                   # (tb, L, H)

    # Softmax over the key / latent axis (all f32).
    m = jnp.max(s3, axis=1, keepdims=True)                                 # (tb, 1, H)
    p = jnp.exp(s3 - m)
    d = jnp.sum(p, axis=1, keepdims=True)
    p = p * pl.reciprocal(d, approx=approx_recip)                          # (tb, L, H)

    # Values + per-head probability expansion onto the value lanes.
    v = jnp.dot(x2, wv_ref[...], preferred_element_type=jnp.float32)       # (rows, I)
    pf = jnp.dot(p.reshape(rows, p.shape[2]).astype(ev_ref.dtype), ev_ref[...],
                 preferred_element_type=jnp.float32)                       # (rows, I)
    a2 = jnp.sum((pf * v).reshape(tb, seq, inner), axis=1)                 # (tb, I)

    # Folded epilogue: a2 @ (Wo @ Wl) + (bo @ Wl + bl), lane-padded classes.
    logits = jnp.dot(a2.astype(wol_ref.dtype), wol_ref[...],
                     preferred_element_type=jnp.float32) + bl_ref[...]     # (tb, Cp)
    out_ref[...] = logits.astype(out_ref.dtype)


def classification_head(x, params, *, heads, block_batch=128,
                        compute_dtype=jnp.bfloat16, approx_reciprocal=True,
                        vmem_budget_bytes=40 * 1024 * 1024):
    """x: (bs, n_latents, in_dim) -> logits (bs, n_classes), float32."""
    bs, seq, in_dim = x.shape
    oq, wq, wk, wv, wo, bo, wl, bl = (
        params["output_query"], params["wq"], params["wk"], params["wv"],
        params["wo"], params["bo"], params["wl"], params["bl"])
    nq, qc = oq.shape
    inner = wq.shape[1]
    n_classes = wl.shape[1]
    assert nq == 1, "squeeze(dim=1) requires n_output_queries == 1"
    assert inner % heads == 0
    dh = inner // heads
    scale = 1.0 / math.sqrt(dh)

    f32 = jnp.float32
    cdtype = jnp.dtype(compute_dtype)

    # ---- batch-invariant precompute (wrapper, done once) -------------------
    q = (jnp.dot(oq.astype(f32), wq.astype(f32)) * scale)[0]               # (I,)
    head_id = jnp.arange(inner) // dh                                      # (I,)
    one_hot = (head_id[:, None] == jnp.arange(heads)[None, :]).astype(f32) # (I, H)
    # scores: (x @ Wk) @ (q * onehot)  ==  x @ (Wk @ (q * onehot))
    wkq = jnp.dot(wk.astype(f32), q[:, None] * one_hot)                    # (D, H)
    ev = one_hot.T                                                         # (H, I)
    # Folded epilogue weight / bias, lane-padded to a multiple of 128.
    c_pad = 128 * pl.cdiv(n_classes, 128)
    w_ol = jnp.dot(wo.astype(f32), wl.astype(f32))                         # (I, C)
    w_ol = jnp.zeros((inner, c_pad), f32).at[:, :n_classes].set(w_ol)
    bl_eff = jnp.dot(bo.astype(f32), wl.astype(f32)) + bl.astype(f32)      # (1, C)
    bl_eff = jnp.zeros((1, c_pad), f32).at[:, :n_classes].set(bl_eff)

    # ---- key (n_latents) padding + additive softmax mask --------------------
    seq_pad = 8 * pl.cdiv(seq, 8)          # f32 intermediates -> 8-sublane align
    kmask = jnp.where(jnp.arange(seq_pad)[:, None] < seq, 0.0, -1e30).astype(f32)
    kmask = jnp.broadcast_to(kmask, (seq_pad, heads))

    # ---- batch-tile selection (clamp to real batch, fit VMEM budget) -------
    itemsize = cdtype.itemsize

    def est_vmem(tb):
        rows = tb * seq_pad
        w_bytes = (in_dim * heads + in_dim * inner + heads * inner
                   + inner * c_pad) * itemsize + (c_pad + seq_pad * heads) * 4
        return (2 * rows * in_dim * itemsize        # x tile (double-buffered)
                + 2 * tb * c_pad * 4                # out tile (double-buffered)
                + 2 * w_bytes                       # weights (worst case 2 bufs)
                + rows * (2 * heads + 3 * inner) * 4)   # f32 intermediates

    tb = max(8, 8 * (min(block_batch, 8 * pl.cdiv(bs, 8)) // 8))
    if bs >= 16 and pl.cdiv(bs, tb) < 2:
        tb = max(8, 8 * pl.cdiv(pl.cdiv(bs, 2), 8))   # >=2 grid steps (v7x: 2 TCs)
    while tb > 8 and est_vmem(tb) > vmem_budget_bytes:
        tb -= 8
    vmem_limit = int(min(max(32 * 2**20, 1.5 * est_vmem(tb)), 64 * 2**20))

    bs_pad = tb * pl.cdiv(bs, tb)
    x_p = jnp.pad(x, ((0, bs_pad - bs), (0, seq_pad - seq), (0, 0)))
    # Pre-flatten so the kernel never reshapes the streamed tile.
    x_flat = x_p.astype(cdtype).reshape(bs_pad * seq_pad, in_dim)

    kernel = functools.partial(_head_kernel, approx_recip=approx_reciprocal)
    rows_blk = tb * seq_pad

    def build(single_buffer_weights):
        def wspec(shape):
            idx = lambda b: (0,) * len(shape)
            if single_buffer_weights:
                return pl.BlockSpec(shape, idx, pipeline_mode=pl.Buffered(1))
            return pl.BlockSpec(shape, idx)

        return pl.pallas_call(
            kernel,
            out_shape=jax.ShapeDtypeStruct((bs_pad, c_pad), f32),
            grid_spec=pltpu.PrefetchScalarGridSpec(
                num_scalar_prefetch=0,
                grid=(bs_pad // tb,),
                in_specs=[
                    pl.BlockSpec((rows_blk, in_dim), lambda b: (b, 0)),  # x rows
                    wspec((in_dim, heads)),     # Wk with scaled block-diag q folded
                    wspec((in_dim, inner)),     # Wv
                    wspec((heads, inner)),      # head -> value-lane expansion
                    wspec((inner, c_pad)),      # Wo @ Wl (lane padded)
                    wspec((1, c_pad)),          # bo @ Wl + bl (lane padded)
                    wspec((seq_pad, heads)),    # key-padding mask
                ],
                out_specs=pl.BlockSpec((tb, c_pad), lambda b: (b, 0)),
            ),
            compiler_params=pltpu.CompilerParams(
                dimension_semantics=("parallel",),
                vmem_limit_bytes=vmem_limit),
        )

    args = (x_flat, wkq.astype(cdtype), wv.astype(cdtype), ev.astype(cdtype),
            w_ol.astype(cdtype), bl_eff, kmask)
    try:
        out = jax.block_until_ready(build(True)(*args))
    except Exception:
        # pipeline_mode=pl.Buffered(1) not supported by this JAX build; fall back
        # to default (double-buffered) weight pipelining.
        out = build(False)(*args)

    return out[:bs, :n_classes]


def _reference(x, params, *, heads):
    """Pure-JAX reference (mirrors the PyTorch semantics, unfused)."""
    oq, wq, wk, wv, wo, bo, wl, bl = (
        params["output_query"], params["wq"], params["wk"], params["wv"],
        params["wo"], params["bo"], params["wl"], params["bl"])
    bs, seq, _ = x.shape
    nq, qc = oq.shape
    inner = wq.shape[1]
    dh = inner // heads
    scale = 1.0 / math.sqrt(dh)

    q = jnp.einsum("nc,ci->ni", oq, wq)
    q = jnp.broadcast_to(q, (bs, nq, inner))
    k = jnp.einsum("bld,di->bli", x, wk)
    v = jnp.einsum("bld,di->bli", x, wv)

    qh = q.reshape(bs, nq, heads, dh)
    kh = k.reshape(bs, seq, heads, dh)
    vh = v.reshape(bs, seq, heads, dh)
    s = jnp.einsum("bnhd,blhd->bhnl", qh, kh) * scale
    p = jax.nn.softmax(s, axis=-1)
    a = jnp.einsum("bhnl,blhd->bnhd", p, vh).reshape(bs, nq, inner)
    o = jnp.einsum("bni,ic->bnc", a, wo) + bo[0]
    logits = jnp.einsum("bnc,ck->bnk", o, wl) + bl[0]
    return logits[:, 0, :]


def make_params(key, in_dim, n_classes, qc, nq, heads):
    inner = qc  # inner_dim = n_output_query_channels (divisible by heads)
    assert inner % heads == 0
    ks = jax.random.split(key, 8)
    return {
        "output_query": jax.random.normal(ks[0], (nq, qc), jnp.float32),
        "wq": jax.random.normal(ks[1], (qc, inner), jnp.float32) * 0.05,
        "wk": jax.random.normal(ks[2], (in_dim, inner), jnp.float32) * 0.05,
        "wv": jax.random.normal(ks[3], (in_dim, inner), jnp.float32) * 0.05,
        "wo": jax.random.normal(ks[4], (inner, qc), jnp.float32) * 0.05,
        "bo": jax.random.normal(ks[5], (1, qc), jnp.float32) * 0.05,
        "wl": jax.random.normal(ks[6], (qc, n_classes), jnp.float32) * 0.05,
        "bl": jax.random.normal(ks[7], (1, n_classes), jnp.float32) * 0.05,
    }


if __name__ == "__main__":
    # Small shapes consistent with the module: x is (bs, n_latents, latent_dim).
    bs, n_latents, in_dim = 2, 8, 32
    n_classes = 10
    n_output_query_channels = 32
    n_output_queries = 1
    heads = 4

    key = jax.random.PRNGKey(0)
    kx, kp = jax.random.split(key)
    x = jax.random.normal(kx, (bs, n_latents, in_dim), jnp.float32)
    params = make_params(kp, in_dim, n_classes, n_output_query_channels,
                         n_output_queries, heads)

    ref = _reference(x, params, heads=heads)

    # Fast path: bf16 matmul operands, f32 accumulation, approx EUP reciprocal.
    logits = classification_head(x, params, heads=heads)
    logits = jax.block_until_ready(logits)
    assert logits.shape == (bs, n_classes)
    assert jnp.allclose(logits, ref, atol=2e-2, rtol=2e-2), "bf16 path mismatch"

    # Verification path: f32 operands, exact reciprocal -> tight tolerance.
    logits32 = classification_head(x, params, heads=heads,
                                   compute_dtype=jnp.float32,
                                   approx_reciprocal=False)
    logits32 = jax.block_until_ready(logits32)
    assert logits32.shape == (bs, n_classes)
    assert jnp.allclose(logits32, ref, atol=1e-4, rtol=1e-4), "f32 path mismatch"

    print("KERNEL_OK")
</pallas_src>

<mosaic_0001>
module attributes {stable_mosaic.version = 11 : i64} {
  func.func @_head_kernel(%arg0: i32, %arg1: memref<64x32xbf16, #tpu.memory_space<vmem>>, %arg2: memref<32x4xbf16, #tpu.memory_space<vmem>>, %arg3: memref<32x32xbf16, #tpu.memory_space<vmem>>, %arg4: memref<4x32xbf16, #tpu.memory_space<vmem>>, %arg5: memref<32x128xbf16, #tpu.memory_space<vmem>>, %arg6: memref<1x128xf32, #tpu.memory_space<vmem>>, %arg7: memref<8x4xf32, #tpu.memory_space<vmem>>, %arg8: memref<8x128xf32, #tpu.memory_space<vmem>>) attributes {dimension_semantics = [#tpu.dimension_semantics<parallel>], iteration_bounds = array<i64: 1>, scalar_prefetch = 0 : i64, scratch_operands = 0 : i64, tpu.core_type = #tpu.core_type<tc>, window_params = [{transform_indices = @transform_0, window_bounds = array<i64: 64, 32>}, {pipeline_mode = #tpu.pipeline_mode<synchronous>, transform_indices = @transform_1, window_bounds = array<i64: 32, 4>}, {pipeline_mode = #tpu.pipeline_mode<synchronous>, transform_indices = @transform_2, window_bounds = array<i64: 32, 32>}, {pipeline_mode = #tpu.pipeline_mode<synchronous>, transform_indices = @transform_3, window_bounds = array<i64: 4, 32>}, {pipeline_mode = #tpu.pipeline_mode<synchronous>, transform_indices = @transform_4, window_bounds = array<i64: 32, 128>}, {pipeline_mode = #tpu.pipeline_mode<synchronous>, transform_indices = @transform_5, window_bounds = array<i64: 1, 128>}, {pipeline_mode = #tpu.pipeline_mode<synchronous>, transform_indices = @transform_6, window_bounds = array<i64: 8, 4>}, {transform_indices = @transform_7, window_bounds = array<i64: 8, 128>}]} {
    %c0 = arith.constant 0 : index
    %c0_0 = arith.constant 0 : index
    %0 = vector.load %arg1[%c0, %c0_0] : memref<64x32xbf16, #tpu.memory_space<vmem>>, vector<64x32xbf16>
    %c0_1 = arith.constant 0 : index
    %c0_2 = arith.constant 0 : index
    %1 = vector.load %arg2[%c0_1, %c0_2] : memref<32x4xbf16, #tpu.memory_space<vmem>>, vector<32x4xbf16>
    %cst = arith.constant dense<0.000000e+00> : vector<64x4xf32>
    %2 = tpu.matmul %0, %1, %cst {dimension_numbers = #tpu.dot_dimension_numbers<[1], [0], [0], [1], [0, 0, 1, 1], [], []>} : vector<64x32xbf16>, vector<32x4xbf16>, vector<64x4xf32> -> vector<64x4xf32>
    %3 = vector.shape_cast %2 : vector<64x4xf32> to vector<8x8x4xf32>
    %c0_3 = arith.constant 0 : index
    %c0_4 = arith.constant 0 : index
    %4 = vector.load %arg7[%c0_3, %c0_4] : memref<8x4xf32, #tpu.memory_space<vmem>>, vector<8x4xf32>
    %5 = vector.shape_cast %4 : vector<8x4xf32> to vector<1x8x4xf32>
    %6 = vector.broadcast %5 : vector<1x8x4xf32> to vector<8x8x4xf32>
    %7 = arith.addf %3, %6 : vector<8x8x4xf32>
    %cst_5 = arith.constant dense<0xFF800000> : vector<8x4xf32>
    %8 = vector.multi_reduction <maximumf>, %7, %cst_5 [1] : vector<8x8x4xf32> to vector<8x4xf32>
    %9 = vector.shape_cast %8 : vector<8x4xf32> to vector<8x1x4xf32>
    %10 = vector.broadcast %9 : vector<8x1x4xf32> to vector<8x8x4xf32>
    %11 = arith.subf %7, %10 : vector<8x8x4xf32>
    %12 = math.exp %11 : vector<8x8x4xf32>
    %cst_6 = arith.constant dense<0.000000e+00> : vector<8x4xf32>
    %13 = vector.multi_reduction <add>, %12, %cst_6 [1] : vector<8x8x4xf32> to vector<8x4xf32>
    %14 = vector.shape_cast %13 : vector<8x4xf32> to vector<8x1x4xf32>
    %15 = tpu.reciprocal %14 {approx = true} : vector<8x1x4xf32> -> vector<8x1x4xf32>
    %16 = vector.broadcast %15 : vector<8x1x4xf32> to vector<8x8x4xf32>
    %17 = arith.mulf %12, %16 : vector<8x8x4xf32>
    %c0_7 = arith.constant 0 : index
    %c0_8 = arith.constant 0 : index
    %18 = vector.load %arg3[%c0_7, %c0_8] : memref<32x32xbf16, #tpu.memory_space<vmem>>, vector<32x32xbf16>
    %cst_9 = arith.constant dense<0.000000e+00> : vector<64x32xf32>
    %19 = tpu.matmul %0, %18, %cst_9 {dimension_numbers = #tpu.dot_dimension_numbers<[1], [0], [0], [1], [0, 0, 1, 1], [], []>} : vector<64x32xbf16>, vector<32x32xbf16>, vector<64x32xf32> -> vector<64x32xf32>
    %20 = vector.shape_cast %17 : vector<8x8x4xf32> to vector<64x4xf32>
    %21 = arith.truncf %20 : vector<64x4xf32> to vector<64x4xbf16>
    %c0_10 = arith.constant 0 : index
    %c0_11 = arith.constant 0 : index
    %22 = vector.load %arg4[%c0_10, %c0_11] : memref<4x32xbf16, #tpu.memory_space<vmem>>, vector<4x32xbf16>
    %cst_12 = arith.constant dense<0.000000e+00> : vector<64x32xf32>
    %23 = tpu.matmul %21, %22, %cst_12 {dimension_numbers = #tpu.dot_dimension_numbers<[1], [0], [0], [1], [0, 0, 1, 1], [], []>} : vector<64x4xbf16>, vector<4x32xbf16>, vector<64x32xf32> -> vector<64x32xf32>
    %24 = arith.mulf %23, %19 : vector<64x32xf32>
    %25 = vector.shape_cast %24 : vector<64x32xf32> to vector<8x8x32xf32>
    %cst_13 = arith.constant dense<0.000000e+00> : vector<8x32xf32>
    %26 = vector.multi_reduction <add>, %25, %cst_13 [1] : vector<8x8x32xf32> to vector<8x32xf32>
    %27 = arith.truncf %26 : vector<8x32xf32> to vector<8x32xbf16>
    %c0_14 = arith.constant 0 : index
    %c0_15 = arith.constant 0 : index
    %28 = vector.load %arg5[%c0_14, %c0_15] : memref<32x128xbf16, #tpu.memory_space<vmem>>, vector<32x128xbf16>
    %cst_16 = arith.constant dense<0.000000e+00> : vector<8x128xf32>
    %29 = tpu.matmul %27, %28, %cst_16 {dimension_numbers = #tpu.dot_dimension_numbers<[1], [0], [0], [1], [0, 0, 1, 1], [], []>} : vector<8x32xbf16>, vector<32x128xbf16>, vector<8x128xf32> -> vector<8x128xf32>
    %c0_17 = arith.constant 0 : index
    %c0_18 = arith.constant 0 : index
    %30 = vector.load %arg6[%c0_17, %c0_18] : memref<1x128xf32, #tpu.memory_space<vmem>>, vector<1x128xf32>
    %31 = vector.broadcast %30 : vector<1x128xf32> to vector<8x128xf32>
    %32 = arith.addf %29, %31 : vector<8x128xf32>
    %c0_19 = arith.constant 0 : index
    %c0_20 = arith.constant 0 : index
    %33 = vector.load %arg8[%c0_19, %c0_20] : memref<8x128xf32, #tpu.memory_space<vmem>>, vector<8x128xf32>
    tpu.vector_store %arg8[%c0_19, %c0_20], %32 {strides = array<i32>} : memref<8x128xf32, #tpu.memory_space<vmem>>, vector<8x128xf32>,
    return
  }
  func.func @transform_0(%arg0: i32) -> (i32, i32) {
    %c0_i32 = arith.constant 0 : i32
    %c0_i32_0 = arith.constant 0 : i32
    return %arg0, %c0_i32 : i32, i32
  }
  func.func @transform_1(%arg0: i32) -> (i32, i32) {
    %c0_i32 = arith.constant 0 : i32
    %c0_i32_0 = arith.constant 0 : i32
    %c0_i32_1 = arith.constant 0 : i32
    return %c0_i32, %c0_i32_0 : i32, i32
  }
  func.func @transform_2(%arg0: i32) -> (i32, i32) {
    %c0_i32 = arith.constant 0 : i32
    %c0_i32_0 = arith.constant 0 : i32
    %c0_i32_1 = arith.constant 0 : i32
    return %c0_i32, %c0_i32_0 : i32, i32
  }
  func.func @transform_3(%arg0: i32) -> (i32, i32) {
    %c0_i32 = arith.constant 0 : i32
    %c0_i32_0 = arith.constant 0 : i32
    %c0_i32_1 = arith.constant 0 : i32
    return %c0_i32, %c0_i32_0 : i32, i32
  }
  func.func @transform_4(%arg0: i32) -> (i32, i32) {
    %c0_i32 = arith.constant 0 : i32
    %c0_i32_0 = arith.constant 0 : i32
    %c0_i32_1 = arith.constant 0 : i32
    return %c0_i32, %c0_i32_0 : i32, i32
  }
  func.func @transform_5(%arg0: i32) -> (i32, i32) {
    %c0_i32 = arith.constant 0 : i32
    %c0_i32_0 = arith.constant 0 : i32
    %c0_i32_1 = arith.constant 0 : i32
    return %c0_i32, %c0_i32_0 : i32, i32
  }
  func.func @transform_6(%arg0: i32) -> (i32, i32) {
    %c0_i32 = arith.constant 0 : i32
    %c0_i32_0 = arith.constant 0 : i32
    %c0_i32_1 = arith.constant 0 : i32
    return %c0_i32, %c0_i32_0 : i32, i32
  }
  func.func @transform_7(%arg0: i32) -> (i32, i32) {
    %c0_i32 = arith.constant 0 : i32
    %c0_i32_0 = arith.constant 0 : i32
    return %arg0, %c0_i32 : i32, i32
  }
}

module attributes {stable_mosaic.version = 11 : i64} {
  func.func @_head_kernel(%arg0: i32, %arg1: memref<64x32xbf16, #tpu.memory_space<vmem>>, %arg2: memref<32x4xbf16, #tpu.memory_space<vmem>>, %arg3: memref<32x32xbf16, #tpu.memory_space<vmem>>, %arg4: memref<4x32xbf16, #tpu.memory_space<vmem>>, %arg5: memref<32x128xbf16, #tpu.memory_space<vmem>>, %arg6: memref<1x128xf32, #tpu.memory_space<vmem>>, %arg7: memref<8x4xf32, #tpu.memory_space<vmem>>, %arg8: memref<8x128xf32, #tpu.memory_space<vmem>>) attributes {dimension_semantics = [#tpu.dimension_semantics<parallel>], iteration_bounds = array<i64: 1>, scalar_prefetch = 0 : i64, scratch_operands = 0 : i64, tpu.core_type = #tpu.core_type<tc>, window_params = [{transform_indices = @transform_0, window_bounds = array<i64: 64, 32>}, {pipeline_mode = #tpu.pipeline_mode<synchronous>, transform_indices = @transform_1, window_bounds = array<i64: 32, 4>}, {pipeline_mode = #tpu.pipeline_mode<synchronous>, transform_indices = @transform_2, window_bounds = array<i64: 32, 32>}, {pipeline_mode = #tpu.pipeline_mode<synchronous>, transform_indices = @transform_3, window_bounds = array<i64: 4, 32>}, {pipeline_mode = #tpu.pipeline_mode<synchronous>, transform_indices = @transform_4, window_bounds = array<i64: 32, 128>}, {pipeline_mode = #tpu.pipeline_mode<synchronous>, transform_indices = @transform_5, window_bounds = array<i64: 1, 128>}, {pipeline_mode = #tpu.pipeline_mode<synchronous>, transform_indices = @transform_6, window_bounds = array<i64: 8, 4>}, {transform_indices = @transform_7, window_bounds = array<i64: 8, 128>}]} {
    %c0 = arith.constant 0 : index
    %c0_0 = arith.constant 0 : index
    %0 = vector.load %arg1[%c0, %c0_0] : memref<64x32xbf16, #tpu.memory_space<vmem>>, vector<64x32xbf16>
    %c0_1 = arith.constant 0 : index
    %c0_2 = arith.constant 0 : index
    %1 = vector.load %arg2[%c0_1, %c0_2] : memref<32x4xbf16, #tpu.memory_space<vmem>>, vector<32x4xbf16>
    %cst = arith.constant dense<0.000000e+00> : vector<64x4xf32>
    %2 = tpu.matmul %0, %1, %cst {dimension_numbers = #tpu.dot_dimension_numbers<[1], [0], [0], [1], [0, 0, 1, 1], [], []>} : vector<64x32xbf16>, vector<32x4xbf16>, vector<64x4xf32> -> vector<64x4xf32>
    %3 = vector.shape_cast %2 : vector<64x4xf32> to vector<8x8x4xf32>
    %c0_3 = arith.constant 0 : index
    %c0_4 = arith.constant 0 : index
    %4 = vector.load %arg7[%c0_3, %c0_4] : memref<8x4xf32, #tpu.memory_space<vmem>>, vector<8x4xf32>
    %5 = vector.shape_cast %4 : vector<8x4xf32> to vector<1x8x4xf32>
    %6 = vector.broadcast %5 : vector<1x8x4xf32> to vector<8x8x4xf32>
    %7 = arith.addf %3, %6 : vector<8x8x4xf32>
    %cst_5 = arith.constant dense<0xFF800000> : vector<8x4xf32>
    %8 = vector.multi_reduction <maximumf>, %7, %cst_5 [1] : vector<8x8x4xf32> to vector<8x4xf32>
    %9 = vector.shape_cast %8 : vector<8x4xf32> to vector<8x1x4xf32>
    %10 = vector.broadcast %9 : vector<8x1x4xf32> to vector<8x8x4xf32>
    %11 = arith.subf %7, %10 : vector<8x8x4xf32>
    %12 = math.exp %11 : vector<8x8x4xf32>
    %cst_6 = arith.constant dense<0.000000e+00> : vector<8x4xf32>
    %13 = vector.multi_reduction <add>, %12, %cst_6 [1] : vector<8x8x4xf32> to vector<8x4xf32>
    %14 = vector.shape_cast %13 : vector<8x4xf32> to vector<8x1x4xf32>
    %15 = tpu.reciprocal %14 {approx = true} : vector<8x1x4xf32> -> vector<8x1x4xf32>
    %16 = vector.broadcast %15 : vector<8x1x4xf32> to vector<8x8x4xf32>
    %17 = arith.mulf %12, %16 : vector<8x8x4xf32>
    %c0_7 = arith.constant 0 : index
    %c0_8 = arith.constant 0 : index
    %18 = vector.load %arg3[%c0_7, %c0_8] : memref<32x32xbf16, #tpu.memory_space<vmem>>, vector<32x32xbf16>
    %cst_9 = arith.constant dense<0.000000e+00> : vector<64x32xf32>
    %19 = tpu.matmul %0, %18, %cst_9 {dimension_numbers = #tpu.dot_dimension_numbers<[1], [0], [0], [1], [0, 0, 1, 1], [], []>} : vector<64x32xbf16>, vector<32x32xbf16>, vector<64x32xf32> -> vector<64x32xf32>
    %20 = vector.shape_cast %17 : vector<8x8x4xf32> to vector<64x4xf32>
    %21 = arith.truncf %20 : vector<64x4xf32> to vector<64x4xbf16>
    %c0_10 = arith.constant 0 : index
    %c0_11 = arith.constant 0 : index
    %22 = vector.load %arg4[%c0_10, %c0_11] : memref<4x32xbf16, #tpu.memory_space<vmem>>, vector<4x32xbf16>
    %cst_12 = arith.constant dense<0.000000e+00> : vector<64x32xf32>
    %23 = tpu.matmul %21, %22, %cst_12 {dimension_numbers = #tpu.dot_dimension_numbers<[1], [0], [0], [1], [0, 0, 1, 1], [], []>} : vector<64x4xbf16>, vector<4x32xbf16>, vector<64x32xf32> -> vector<64x32xf32>
    %24 = arith.mulf %23, %19 : vector<64x32xf32>
    %25 = vector.shape_cast %24 : vector<64x32xf32> to vector<8x8x32xf32>
    %cst_13 = arith.constant dense<0.000000e+00> : vector<8x32xf32>
    %26 = vector.multi_reduction <add>, %25, %cst_13 [1] : vector<8x8x32xf32> to vector<8x32xf32>
    %27 = arith.truncf %26 : vector<8x32xf32> to vector<8x32xbf16>
    %c0_14 = arith.constant 0 : index
    %c0_15 = arith.constant 0 : index
    %28 = vector.load %arg5[%c0_14, %c0_15] : memref<32x128xbf16, #tpu.memory_space<vmem>>, vector<32x128xbf16>
    %cst_16 = arith.constant dense<0.000000e+00> : vector<8x128xf32>
    %29 = tpu.matmul %27, %28, %cst_16 {dimension_numbers = #tpu.dot_dimension_numbers<[1], [0], [0], [1], [0, 0, 1, 1], [], []>} : vector<8x32xbf16>, vector<32x128xbf16>, vector<8x128xf32> -> vector<8x128xf32>
    %c0_17 = arith.constant 0 : index
    %c0_18 = arith.constant 0 : index
    %30 = vector.load %arg6[%c0_17, %c0_18] : memref<1x128xf32, #tpu.memory_space<vmem>>, vector<1x128xf32>
    %31 = vector.broadcast %30 : vector<1x128xf32> to vector<8x128xf32>
    %32 = arith.addf %29, %31 : vector<8x128xf32>
    %c0_19 = arith.constant 0 : index
    %c0_20 = arith.constant 0 : index
    %33 = vector.load %arg8[%c0_19, %c0_20] : memref<8x128xf32, #tpu.memory_space<vmem>>, vector<8x128xf32>
    tpu.vector_store %arg8[%c0_19, %c0_20], %32 {strides = array<i32>} : memref<8x128xf32, #tpu.memory_space<vmem>>, vector<8x128xf32>,
    return
  }
  func.func @transform_0(%arg0: i32) -> (i32, i32) {
    %c0_i32 = arith.constant 0 : i32
    %c0_i32_0 = arith.constant 0 : i32
    return %arg0, %c0_i32 : i32, i32
  }
  func.func @transform_1(%arg0: i32) -> (i32, i32) {
    %c0_i32 = arith.constant 0 : i32
    %c0_i32_0 = arith.constant 0 : i32
    %c0_i32_1 = arith.constant 0 : i32
    return %c0_i32, %c0_i32_0 : i32, i32
  }
  func.func @transform_2(%arg0: i32) -> (i32, i32) {
    %c0_i32 = arith.constant 0 : i32
    %c0_i32_0 = arith.constant 0 : i32
    %c0_i32_1 = arith.constant 0 : i32
    return %c0_i32, %c0_i32_0 : i32, i32
  }
  func.func @transform_3(%arg0: i32) -> (i32, i32) {
    %c0_i32 = arith.constant 0 : i32
    %c0_i32_0 = arith.constant 0 : i32
    %c0_i32_1 = arith.constant 0 : i32
    return %c0_i32, %c0_i32_0 : i32, i32
  }
  func.func @transform_4(%arg0: i32) -> (i32, i32) {
    %c0_i32 = arith.constant 0 : i32
    %c0_i32_0 = arith.constant 0 : i32
    %c0_i32_1 = arith.constant 0 : i32
    return %c0_i32, %c0_i32_0 : i32, i32
  }
  func.func @transform_5(%arg0: i32) -> (i32, i32) {
    %c0_i32 = arith.constant 0 : i32
    %c0_i32_0 = arith.constant 0 : i32
    %c0_i32_1 = arith.constant 0 : i32
    return %c0_i32, %c0_i32_0 : i32, i32
  }
  func.func @transform_6(%arg0: i32) -> (i32, i32) {
    %c0_i32 = arith.constant 0 : i32
    %c0_i32_0 = arith.constant 0 : i32
    %c0_i32_1 = arith.constant 0 : i32
    return %c0_i32, %c0_i32_0 : i32, i32
  }
  func.func @transform_7(%arg0: i32) -> (i32, i32) {
    %c0_i32 = arith.constant 0 : i32
    %c0_i32_0 = arith.constant 0 : i32
    return %arg0, %c0_i32 : i32, i32
  }
}

</mosaic_0001>

<bundles_post_ra>
// kernel: tpu_custom_call.1
= control target key start
LH: loop header
LB: loop body
LE: loop exit
PB: predicated region body
PF: predicated region fallthrough
CT: control target
= control target key end

     0   :  { %vm72_vm0 = vcmask 261120   ;;  %s971_s0 = inlined_call_operand.vmem [shape: bf16[64,32], index: 0, kind: input, shape index: {}]   ;;  %s972_s1 = inlined_call_operand.vmem [shape: bf16[32,4], index: 1, kind: input, shape index: {}]   ;;  %s973_s2 = inlined_call_operand.vmem [shape: bf16[32,32], index: 2, kind: input, shape index: {}]   ;;  %s974_s3 = inlined_call_operand.vmem [shape: bf16[4,32], index: 3, kind: input, shape index: {}]   ;;  %s975_s4 = inlined_call_operand.vmem [shape: bf16[32,128], index: 4, kind: input, shape index: {}]   ;;  %s976_s5 = inlined_call_operand.vmem [shape: f32[1,128], index: 5, kind: input, shape index: {}]   ;;  %s977_s6 = inlined_call_operand.vmem [shape: f32[8,4], index: 6, kind: input, shape index: {}]   ;;  %s978_s7 = inlined_call_operand.hbm [shape: f32[8,128], index: 7, kind: output, shape index: {}]  }
   0x1   :  { %v753_v0 = vld [vmem:[%s972_s1 + $0x8] sm:$0xff]   ;;  %v754_v1 = vld [vmem:[%s972_s1] sm:$0xff]   ;;  %v757_v4 = vld [vmem:[%s971_s0 + $0x10] sm:$0xff]  }
   0x2   :  { %707 = vmatprep.subr.bf16.mxu0 %v753_v0  ;;  %v755_v2 = vld [vmem:[%s971_s0] sm:$0xff]   ;;  %v756_v3 = vld [vmem:[%s971_s0 + $0x8] sm:$0xff]  }
   0x3   :  { %708 = vmatpush3.bf16.msra.mxu0 %v753_v0  ;;  %711 = vmatprep.mubr.msk.bf16.mxu0 %vm72_vm0, %v755_v2 }
   0x4   :  { %709 = vmatprep.subr.bf16.mxu0 %v754_v1  ;;  %723 = vmatprep.mubr.msk.bf16.mxu1 %vm72_vm0, %v755_v2 }
   0x7   :  { %710 = vmatpush3.bf16.msra.mxu0 %v754_v1 }
   0x8   :  { %12 = vsyncpa [#allocation3], 0  ;;  %v758_v5 = vld [vmem:[%s971_s0 + $0x18] sm:$0xff]   ;;  %v759_v6 = vld [vmem:[%s973_s2 + $0x8] sm:$0xff]   ;;  %vm410_vm1 = vcmask 1041408   ;;  %vm159_vm2 = vcmask 31744  }
   0x9   :  { %719 = vmatprep.subr.bf16.mxu1 %v759_v6  ;;  %v760_v7 = vld [vmem:[%s973_s2] sm:$0xff]   ;;  %vm818_vm3 = vmmov 0   ;;  %vm578_vm4 = vcmask 1041409   ;;  %vm580_vm5 = vcmask 1042434   ;;  %vm582_vm6 = vcmask 1043459   ;;  %s819_s21 = smov [#allocation2]  }
   0xa   :  { %712 = vmatmul.mubr.msk.bf16.vlgmr.msra.gmra.mxu0 %vm72_vm0, %v756_v3  ;;  %720 = vmatpush3.bf16.msra.mxu1 %v759_v6  ;;  %v397_v8 = vld [vmem:[%s974_s3] sm:$0x3]  ;;  %vm584_vm7 = vcmask 1044484   ;;  %vm586_vm8 = vcmask 1045509   ;;  %vm588_vm9 = vcmask 1046534   ;;  %vm590_vm10 = vcmask 1047559  }
   0xb   :  { %715 = vmatprep.mubr.msk.bf16.mxu0 %vm72_vm0, %v757_v4  ;;  %721 = vmatprep.subr.bf16.mxu1 %v760_v7  ;;  %v412_v9 = vsel %vm410_vm1, %v397_v8, 0  ;;  %v150_v10 = vld [vmem:[%s977_s6] sm:$0xff]  ;;  %s655_s22 = sshll.u32 %s819_s21, 4  ;;  %s656_s22 = int_to_ptr.vmem [resolvable:$true] %s655_s22 }
   0xc   :  { %749 = vmatprep.subr.msk.bf16.mxu0 %vm410_vm1, %v397_v8  ;;  %s795_s23 = scalar_lea.vmem %s656_s22, 128  ;;  %p800_p1 = scmp.lt.s32.totalorder %s656_s22, %s656_s22 }
   0xd   :  { %732 = vmatpush3.bf16.msra.mxu0 %v412_v9  ;;  %p796_p0 = scmp.ne.s32.totalorder %s656_s22, %s795_s23  ;;  %p801_p2 = scmp.lt.s32.totalorder %s795_s23, %s795_s23 }
   0xe   :  { %722 = vmatpush3.bf16.msra.mxu1 %v760_v7 }
   0xf   :  { %p802_p3 = por %p801_p2, %p800_p1 }
  0x11   :  { %724 = vmatmul.mubr.msk.bf16.vlgmr.msra.gmra.mxu1 %vm72_vm0, %v756_v3  ;;  %p803_p4 = pnand %p802_p3, %p796_p0 }
  0x12   :  { %716 = vmatmul.mubr.msk.bf16.gmra.mxu0 %vm72_vm0, %v758_v5  ;;  %727 = vmatprep.mubr.msk.bf16.mxu1 %vm72_vm0, %v757_v4 }
  0x19   :  { %728 = vmatmul.mubr.msk.bf16.gmra.mxu1 %vm72_vm0, %v758_v5 }
  0xca   :  { %v713_v11 = vpop.f32.mrf.mxu0 }
  0xcb   :  { %v153_v12 = vadd.f32 %v713_v11, %v150_v10 }
  0xcc   :  { %v119_v13 = vpop.f32.mrf.mxu0 }
  0xcd   :  { %v174_v14 = vsel %vm159_vm2, %v153_v12, -inf  ;;  %v151_v15 = vadd.f32 %v150_v10, %v119_v13 }
  0xce   :  { %v175_v16 = vrot.slane %v174_v14, 4  ;;  %v714_v17 = vpop.f32.mrf.mxu0 }
  0xcf   :  { %v160_v18 = vsel %vm159_vm2, %v151_v15, -inf  ;;  %v154_v19 = vadd.f32 %v714_v17, %v150_v10 }
  0xd0   :  { %v176_v20 = vmax.f32 %v174_v14, %v175_v16  ;;  %v161_v21 = vrot.slane %v160_v18, 4  ;;  %v122_v22 = vpop.f32.mrf.mxu0 }
  0xd1   :  { %v181_v23 = vsel %vm159_vm2, %v154_v19, -inf  ;;  %v901_v24 = vadd.f32 %v150_v10, %v122_v22 }
  0xd2   :  { %v177_v25 = vrot.slane %v176_v20, 2  ;;  %v162_v26 = vmax.f32 %v160_v18, %v161_v21  ;;  %v182_v27 = vrot.slane %v181_v23, 4  ;;  %v717_v28 = vpop.f32.mrf.mxu0 }
  0xd3   :  { %v167_v29 = vsel %vm159_vm2, %v901_v24, -inf  ;;  %v905_v30 = vadd.f32 %v717_v28, %v150_v10 }
  0xd4   :  { %v178_v31 = vmax.f32 %v176_v20, %v177_v25  ;;  %v163_v32 = vrot.slane %v162_v26, 2  ;;  %v183_v33 = vmax.f32 %v181_v23, %v182_v27  ;;  %v168_v34 = vrot.slane %v167_v29, 4  ;;  %v135_v35 = vpop.f32.mrf.mxu0 }
  0xd5   :  { %v202_v36 = vsel %vm159_vm2, %v905_v30, -inf  ;;  %v155_v37 = vadd.f32 %v150_v10, %v135_v35 }
  0xd6   :  { %v179_v38 = vrot.slane %v178_v31, 1  ;;  %v164_v39 = vmax.f32 %v162_v26, %v163_v32  ;;  %v184_v40 = vrot.slane %v183_v33, 2  ;;  %v169_v41 = vmax.f32 %v167_v29, %v168_v34  ;;  %v718_v42 = vpop.f32.mrf.mxu0 }
  0xd7   :  { %v203_v43 = vrot.slane %v202_v36, 4  ;;  %v188_v44 = vsel %vm159_vm2, %v155_v37, -inf  ;;  %v158_v45 = vadd.f32 %v718_v42, %v150_v10 }
  0xd8   :  { %v180_v46 = vmax.f32 %v178_v31, %v179_v38  ;;  %v165_v47 = vrot.slane %v164_v39, 1  ;;  %v185_v48 = vmax.f32 %v183_v33, %v184_v40  ;;  %v170_v49 = vrot.slane %v169_v41, 2  ;;  %v138_v50 = vpop.f32.mrf.mxu0 }
  0xd9   :  { %v204_v51 = vmax.f32 %v202_v36, %v203_v43  ;;  %v189_v52 = vrot.slane %v188_v44, 4  ;;  %v209_v53 = vsel %vm159_vm2, %v158_v45, -inf  ;;  %v156_v54 = vadd.f32 %v150_v10, %v138_v50 }
  0xda   :  { %v218_v55 = vsub.f32 %v153_v12, %v180_v46  ;;  %v166_v56 = vmax.f32 %v164_v39, %v165_v47  ;;  %v186_v57 = vrot.slane %v185_v48, 1  ;;  %v171_v58 = vmax.f32 %v169_v41, %v170_v49 }
  0xdb   :  { %v205_v59 = vrot.slane %v204_v51, 2  ;;  %v190_v60 = vmax.f32 %v188_v44, %v189_v52  ;;  %v210_v61 = vrot.slane %v209_v53, 4  ;;  %v195_v62 = vsel %vm159_vm2, %v156_v54, -inf }
  0xdc   :  { %v228_v63 = vmul.f32 1.442695, %v218_v55  ;;  %v216_v0 = vsub.f32 %v151_v15, %v166_v56  ;;  %v187_v1 = vmax.f32 %v185_v48, %v186_v57  ;;  %v172_v2 = vrot.slane %v171_v58, 1 }
  0xdd   :  { %v206_v3 = vmax.f32 %v204_v51, %v205_v59  ;;  %v191_v4 = vrot.slane %v190_v60, 2  ;;  %v211_v5 = vmax.f32 %v209_v53, %v210_v61  ;;  %v196_v6 = vrot.slane %v195_v62, 4 }
  0xde   :  { %763 = vpow2.f32 %v228_v63  ;;  %v224_v7 = vmul.f32 1.442695, %v216_v0  ;;  %v219_v8 = vsub.f32 %v154_v19, %v187_v1  ;;  %v173_v9 = vmax.f32 %v171_v58, %v172_v2 }
  0xdf   :  { %v207_v10 = vrot.slane %v206_v3, 1  ;;  %v192_v11 = vmax.f32 %v190_v60, %v191_v4  ;;  %v212_v12 = vrot.slane %v211_v5, 2  ;;  %v197_v13 = vmax.f32 %v195_v62, %v196_v6 }
  0xe0   :  { %765 = vpow2.f32 %v224_v7  ;;  %v230_v14 = vmul.f32 1.442695, %v219_v8  ;;  %v217_v16 = vsub.f32 %v901_v24, %v173_v9 }
  0xe1   :  { %v208_v17 = vmax.f32 %v206_v3, %v207_v10  ;;  %v193_v15 = vrot.slane %v192_v11, 1  ;;  %v213_v18 = vmax.f32 %v211_v5, %v212_v12  ;;  %v198_v20 = vrot.slane %v197_v13, 2 }
  0xe2   :  { %767 = vpow2.f32 %v230_v14  ;;  %v226_v21 = vmul.f32 1.442695, %v217_v16 }
  0xe3   :  { %v222_v22 = vsub.f32 %v905_v30, %v208_v17  ;;  %v194_v23 = vmax.f32 %v192_v11, %v193_v15  ;;  %v214_v25 = vrot.slane %v213_v18, 1  ;;  %v199_v19 = vmax.f32 %v197_v13, %v198_v20 }
  0xe4   :  { %769 = vpow2.f32 %v226_v21 }
  0xe5   :  { %v236_v26 = vmul.f32 1.442695, %v222_v22  ;;  %v220_v27 = vsub.f32 %v155_v37, %v194_v23  ;;  %v215_v28 = vmax.f32 %v213_v18, %v214_v25  ;;  %v200_v29 = vrot.slane %v199_v19, 1 }
  0xe7   :  { %771 = vpow2.f32 %v236_v26  ;;  %v232_v31 = vmul.f32 1.442695, %v220_v27  ;;  %v223_v32 = vsub.f32 %v158_v45, %v215_v28  ;;  %v201_v24 = vmax.f32 %v199_v19, %v200_v29 }
  0xe9   :  { %773 = vpow2.f32 %v232_v31  ;;  %v238_v33 = vmul.f32 1.442695, %v223_v32  ;;  %v221_v34 = vsub.f32 %v156_v54, %v201_v24 }
  0xeb   :  { %v914_v35 = vpop.eup %763  ;;  %775 = vpow2.f32 %v238_v33  ;;  %v234_v36 = vmul.f32 1.442695, %v221_v34 }
  0xec   :  { %v254_v30 = vsel %vm159_vm2, %v914_v35, 0.0 }
  0xed   :  { %v918_v38 = vpop.eup %765  ;;  %v255_v39 = vrot.slane %v254_v30, 4  ;;  %777 = vpow2.f32 %v234_v36 }
  0xee   :  { %v240_v37 = vsel %vm159_vm2, %v918_v38, 0.0 }
  0xef   :  { %v922_v40 = vpop.eup %767  ;;  %v256_v41 = vadd.f32 %v255_v39, %v254_v30  ;;  %v241_v42 = vrot.slane %v240_v37, 4 }
  0xf0   :  { %v261_v43 = vsel %vm159_vm2, %v922_v40, 0.0 }
  0xf1   :  { %v926_v44 = vpop.eup %769  ;;  %v257_v45 = vrot.slane %v256_v41, 2  ;;  %v242_v46 = vadd.f32 %v241_v42, %v240_v37  ;;  %v262_v47 = vrot.slane %v261_v43, 4 }
  0xf2   :  { %v247_v48 = vsel %vm159_vm2, %v926_v44, 0.0 }
  0xf3   :  { %v258_v49 = vadd.f32 %v257_v45, %v256_v41  ;;  %v243_v50 = vrot.slane %v242_v46, 2  ;;  %v263_v51 = vadd.f32 %v262_v47, %v261_v43  ;;  %v248_v52 = vrot.slane %v247_v48, 4 }
  0xf4   :  { %v930_v53 = vpop.eup %771 }
  0xf5   :  { %v244_v54 = vadd.f32 %v243_v50, %v242_v46  ;;  %v264_v55 = vrot.slane %v263_v51, 2  ;;  %v249_v56 = vadd.f32 %v248_v52, %v247_v48  ;;  %v259_v58 = vrot.slane %v258_v49, 1 }
  0xf6   :  { %v932_v57 = vpop.eup %773  ;;  %v282_v59 = vsel %vm159_vm2, %v930_v53, 0.0 }
  0xf7   :  { %v245_v60 = vrot.slane %v244_v54, 1  ;;  %v265_v61 = vadd.f32 %v264_v55, %v263_v51  ;;  %v250_v62 = vrot.slane %v249_v56, 2  ;;  %v283_v0 = vrot.slane %v282_v59, 4 }
  0xf8   :  { %v776_v63 = vpop.eup %775  ;;  %v268_v1 = vsel %vm159_vm2, %v932_v57, 0.0  ;;  %v260_v6 = vadd.f32 %v259_v58, %v258_v49  ;;  %v817_v58 = vmov 0.0  }
  0xf9   :  { %v246_v2 = vadd.f32 %v245_v60, %v244_v54  ;;  %v266_v3 = vrot.slane %v265_v61, 1  ;;  %v251_v4 = vadd.f32 %v250_v62, %v249_v56  ;;  %v284_v7 = vadd.f32 %v283_v0, %v282_v59  ;;  %741 = vmatprep.subr.bf16.mxu1 %v817_v58  ;;  %745 = vmatprep.mubr.msk.bf16.mxu1 %vm818_vm3, %v817_v58 }
  0xfa   :  { %v778_v5 = vpop.eup %777  ;;  %v269_v8 = vrot.slane %v268_v1, 4  ;;  %v289_v9 = vsel %vm159_vm2, %v776_v63, 0.0 }
  0xfb   :  { %v267_v10 = vadd.f32 %v266_v3, %v265_v61  ;;  %v252_v11 = vrot.slane %v251_v4, 1  ;;  %v290_v12 = vrot.slane %v289_v9, 4  ;;  %779 = vrcp.f32 %v246_v2 }
  0xfc   :  { %v285_v13 = vrot.slane %v284_v7, 2  ;;  %v270_v14 = vadd.f32 %v269_v8, %v268_v1  ;;  %v275_v16 = vsel %vm159_vm2, %v778_v5, 0.0 }
  0xfd   :  { %781 = vrcp.f32 %v267_v10  ;;  %v253_v17 = vadd.f32 %v252_v11, %v251_v4  ;;  %v291_v15 = vadd.f32 %v290_v12, %v289_v9  ;;  %v276_v18 = vrot.slane %v275_v16, 4 }
  0xfe   :  { %783 = vrcp.f32 %v260_v6  ;;  %v286_v20 = vadd.f32 %v285_v13, %v284_v7  ;;  %v271_v21 = vrot.slane %v270_v14, 2 }
  0xff   :  { %785 = vrcp.f32 %v253_v17  ;;  %v292_v22 = vrot.slane %v291_v15, 2  ;;  %v277_v23 = vadd.f32 %v276_v18, %v275_v16 }
 0x100   :  { %v287_v25 = vrot.slane %v286_v20, 1  ;;  %v272_v19 = vadd.f32 %v271_v21, %v270_v14 }
 0x101   :  { %v293_v26 = vadd.f32 %v292_v22, %v291_v15  ;;  %v278_v27 = vrot.slane %v277_v23, 2 }
 0x102   :  { %v273_v28 = vrot.slane %v272_v19, 1  ;;  %v288_v32 = vadd.f32 %v287_v25, %v286_v20 }
 0x103   :  { %v294_v29 = vrot.slane %v293_v26, 1  ;;  %v279_v31 = vadd.f32 %v278_v27, %v277_v23 }
 0x104   :  { %v274_v24 = vadd.f32 %v273_v28, %v272_v19 }
 0x105   :  { %v295_v33 = vadd.f32 %v294_v29, %v293_v26  ;;  %v280_v34 = vrot.slane %v279_v31, 1 }
 0x106   :  { %787 = vrcp.f32 %v274_v24 }
 0x107   :  { %789 = vrcp.f32 %v295_v33  ;;  %v281_v36 = vadd.f32 %v280_v34, %v279_v31 }
 0x108   :  { %791 = vrcp.f32 %v288_v32  ;;  %v780_v30 = vpop.eup %779 }
 0x109   :  { %793 = vrcp.f32 %v281_v36  ;;  %v304_v43 = vmul.f32 %v780_v30, %v918_v38 }
 0x10a   :  { %v782_v39 = vpop.eup %781 }
 0x10b   :  { %v784_v37 = vpop.eup %783  ;;  %v307_v42 = vmul.f32 %v782_v39, %v922_v40 }
 0x10c   :  { %v786_v41 = vpop.eup %785  ;;  %v306_v46 = vmul.f32 %v784_v37, %v914_v35  ;;  %v761_v35 = vld [vmem:[%s975_s4 + $0x8] sm:$0xff]  }
 0x10d   :  { %v305_v45 = vmul.f32 %v786_v41, %v926_v44  ;;  %742 = vmatpush3.bf16.msra.mxu1 %v761_v35 }
 0x10e   :  { %v394_v48 = vpack.c.bf16 %v307_v42, %v306_v46  ;;  %743 = vmatprep.subr.bf16.mxu1 %v817_v58 }
 0x10f   :  { %v393_v47 = vpack.c.bf16 %v305_v45, %v304_v43 }
 0x111   :  { %733 = vmatprep.mubr.msk.bf16.mxu0 %vm159_vm2, %v393_v47 }
 0x112   :  { %734 = vmatmul.mubr.msk.bf16.vlgmr.msra.gmra.mxu0 %vm159_vm2, %v394_v48 }
 0x113   :  { %v788_v49 = vpop.eup %787 }
 0x114   :  { %v790_v50 = vpop.eup %789  ;;  %v308_v55 = vmul.f32 %v788_v49, %v932_v57  ;;  %v762_v57 = vld [vmem:[%s975_s4] sm:$0xff]  }
 0x115   :  { %v792_v51 = vpop.eup %791  ;;  %v311_v54 = vmul.f32 %v790_v50, %v776_v63  ;;  %744 = vmatpush3.bf16.msra.mxu1 %v762_v57 }
 0x116   :  { %v794_v52 = vpop.eup %793  ;;  %v310_v38 = vmul.f32 %v792_v51, %v930_v53  ;;  %v725_v53 = vpop.f32.mrf.mxu1 }
 0x117   :  { %v309_v40 = vmul.f32 %v794_v52, %v778_v5 }
 0x118   :  { %v396_v44 = vpack.c.bf16 %v311_v54, %v310_v38  ;;  %v362_v59 = vpop.f32.mrf.mxu1 }
 0x119   :  { %v395_v56 = vpack.c.bf16 %v309_v40, %v308_v55 }
 0x11a   :  { %v726_v60 = vpop.f32.mrf.mxu1 }
 0x11b   :  { %737 = vmatprep.mubr.msk.bf16.mxu0 %vm159_vm2, %v395_v56 }
 0x11c   :  { %738 = vmatmul.mubr.msk.bf16.gmra.mxu0 %vm159_vm2, %v396_v44  ;;  %v365_v61 = vpop.f32.mrf.mxu1 }
 0x11e   :  { %v729_v4 = vpop.f32.mrf.mxu1 }
 0x120   :  { %v378_v16 = vpop.f32.mrf.mxu1 }
 0x122   :  { %v730_v27 = vpop.f32.mrf.mxu1 }
 0x124   :  { %v381_v45 = vpop.f32.mrf.mxu1 }
 0x1d2   :  { %v735_v62 = vpop.f32.mrf.mxu0 }
 0x1d3   :  { %v481_v63 = vmul.f32 %v735_v62, %v725_v53 }
 0x1d4   :  { %v448_v0 = vpop.f32.mrf.mxu0 }
 0x1d5   :  { %v501_v1 = vsel %vm72_vm0, %v481_v63, 0.0  ;;  %v479_v2 = vmul.f32 %v448_v0, %v362_v59 }
 0x1d6   :  { %v502_v3 = vrot.slane %v501_v1, 4  ;;  %v736_v5 = vpop.f32.mrf.mxu0 }
 0x1d7   :  { %v487_v6 = vsel %vm72_vm0, %v479_v2, 0.0  ;;  %v482_v7 = vmul.f32 %v736_v5, %v726_v60 }
 0x1d8   :  { %v503_v8 = vadd.f32 %v502_v3, %v501_v1  ;;  %v488_v9 = vrot.slane %v487_v6, 4  ;;  %v451_v10 = vpop.f32.mrf.mxu0 }
 0x1d9   :  { %v508_v11 = vsel %vm72_vm0, %v482_v7, 0.0  ;;  %v480_v12 = vmul.f32 %v451_v10, %v365_v61 }
 0x1da   :  { %v504_v13 = vrot.slane %v503_v8, 2  ;;  %v489_v14 = vadd.f32 %v488_v9, %v487_v6  ;;  %v509_v17 = vrot.slane %v508_v11, 4 }
 0x1db   :  { %v494_v15 = vsel %vm72_vm0, %v480_v12, 0.0 }
 0x1dc   :  { %v505_v18 = vadd.f32 %v504_v13, %v503_v8  ;;  %v490_v20 = vrot.slane %v489_v14, 2  ;;  %v510_v21 = vadd.f32 %v509_v17, %v508_v11  ;;  %v495_v22 = vrot.slane %v494_v15, 4  ;;  %v739_v23 = vpop.f32.mrf.mxu0 }
 0x1dd   :  { %v485_v25 = vmul.f32 %v739_v23, %v729_v4 }
 0x1de   :  { %v491_v19 = vadd.f32 %v490_v20, %v489_v14  ;;  %v511_v26 = vrot.slane %v510_v21, 2  ;;  %v496_v28 = vadd.f32 %v495_v22, %v494_v15  ;;  %v464_v29 = vpop.f32.mrf.mxu0  ;;  %v506_v24 = vrot.slane %v505_v18, 1 }
 0x1df   :  { %v529_v31 = vsel %vm72_vm0, %v485_v25, 0.0  ;;  %v483_v32 = vmul.f32 %v464_v29, %v378_v16 }
 0x1e0   :  { %v492_v33 = vrot.slane %v491_v19, 1  ;;  %v512_v34 = vadd.f32 %v511_v26, %v510_v21  ;;  %v497_v36 = vrot.slane %v496_v28, 2  ;;  %v740_v30 = vpop.f32.mrf.mxu0  ;;  %v530_v39 = vrot.slane %v529_v31, 4 }
 0x1e1   :  { %v515_v37 = vsel %vm72_vm0, %v483_v32, 0.0  ;;  %v486_v41 = vmul.f32 %v740_v30, %v730_v27  ;;  %v507_v51 = vadd.f32 %v506_v24, %v505_v18 }
 0x1e2   :  { %v493_v42 = vadd.f32 %v492_v33, %v491_v19  ;;  %v498_v43 = vadd.f32 %v497_v36, %v496_v28  ;;  %v467_v46 = vpop.f32.mrf.mxu0  ;;  %v531_v47 = vadd.f32 %v530_v39, %v529_v31  ;;  %v516_v48 = vrot.slane %v515_v37, 4  ;;  %v683_v36 = vld [vmem:[%s976_s5] ss:$0 sm:$0xff] }
 0x1e3   :  { %v536_v49 = vsel %vm72_vm0, %v486_v41, 0.0  ;;  %v484_v50 = vmul.f32 %v467_v46, %v381_v45  ;;  %v513_v52 = vrot.slane %v512_v34, 1  ;;  %v545_v63 = vpack.c.bf16 %v507_v51, %v507_v51 }
 0x1e4   :  { %v499_v54 = vrot.slane %v498_v43, 1  ;;  %v532_v55 = vrot.slane %v531_v47, 2  ;;  %v517_v40 = vadd.f32 %v516_v48, %v515_v37  ;;  %v537_v38 = vrot.slane %v536_v49, 4 }
 0x1e5   :  { %v522_v56 = vsel %vm72_vm0, %v484_v50, 0.0  ;;  %v543_v44 = vpack.c.bf16 %v493_v42, %v493_v42  ;;  %v514_v60 = vadd.f32 %v513_v52, %v512_v34  ;;  %v572_v11 = vunpack.c.l.b16 %v545_v63 }
 0x1e6   :  { %v500_v35 = vadd.f32 %v499_v54, %v498_v43  ;;  %v523_v58 = vrot.slane %v522_v56, 4  ;;  %v533_v57 = vadd.f32 %v532_v55, %v531_v47  ;;  %v518_v53 = vrot.slane %v517_v40, 2 }
 0x1e7   :  { %v538_v59 = vadd.f32 %v537_v38, %v536_v49  ;;  %v570_v3 = vunpack.c.l.b16 %v543_v44  ;;  %v546_v8 = vpack.c.bf16 %v514_v60, %v514_v60 }
 0x1e8   :  { %v544_v61 = vpack.c.bf16 %v500_v35, %v500_v35  ;;  %v524_v62 = vadd.f32 %v523_v58, %v522_v56  ;;  %v534_v0 = vrot.slane %v533_v57, 1  ;;  %v519_v1 = vadd.f32 %v518_v53, %v517_v40 }
 0x1e9   :  { %v539_v2 = vrot.slane %v538_v59, 2  ;;  %v573_v20 = vunpack.c.l.b16 %v546_v8 }
 0x1ea   :  { %v571_v4 = vunpack.c.l.b16 %v544_v61  ;;  %v525_v5 = vrot.slane %v524_v62, 2  ;;  %v520_v6 = vrot.slane %v519_v1, 1  ;;  %v535_v12 = vadd.f32 %v534_v0, %v533_v57 }
 0x1eb   :  { %v540_v7 = vadd.f32 %v539_v2, %v538_v59 }
 0x1ec   :  { %v579_v9 = vsel %vm578_vm4, %v571_v4, %v570_v3  ;;  %v526_v10 = vadd.f32 %v525_v5, %v524_v62  ;;  %v521_v13 = vadd.f32 %v520_v6, %v519_v1  ;;  %v549_v22 = vpack.c.bf16 %v535_v12, %v535_v12 }
 0x1ed   :  { %v541_v14 = vrot.slane %v540_v7, 1  ;;  %v581_v17 = vsel %vm580_vm5, %v572_v11, %v579_v9 }
 0x1ee   :  { %v527_v16 = vrot.slane %v526_v10, 1  ;;  %v547_v15 = vpack.c.bf16 %v521_v13, %v521_v13  ;;  %v583_v25 = vsel %vm582_vm6, %v573_v20, %v581_v17  ;;  %v576_v28 = vunpack.c.l.b16 %v549_v22 }
 0x1ef   :  { %v542_v18 = vadd.f32 %v541_v14, %v540_v7 }
 0x1f0   :  { %v528_v21 = vadd.f32 %v527_v16, %v526_v10  ;;  %v574_v23 = vunpack.c.l.b16 %v547_v15 }
 0x1f1   :  { %v550_v19 = vpack.c.bf16 %v542_v18, %v542_v18 }
 0x1f2   :  { %v548_v26 = vpack.c.bf16 %v528_v21, %v528_v21  ;;  %v585_v29 = vsel %vm584_vm7, %v574_v23, %v583_v25 }
 0x1f3   :  { %v577_v31 = vunpack.c.l.b16 %v550_v19 }
 0x1f4   :  { %v575_v27 = vunpack.c.l.b16 %v548_v26 }
 0x1f6   :  { %v587_v32 = vsel %vm586_vm8, %v575_v27, %v585_v29 }
 0x1f7   :  { %v589_v24 = vsel %vm588_vm9, %v576_v28, %v587_v32 }
 0x1f8   :  { %v591_v33 = vsel %vm590_vm10, %v577_v31, %v589_v24 }
 0x1f9   :  { %v592_v34 = vpack.c.b16 %v591_v33, %v591_v33 }
 0x1fb   :  { %746 = vmatmul.mubr.msk.bf16.vlgmr.msra.gmra.mxu1 %vm72_vm0, %v592_v34 }
 0x2bb   :  { %v642_v30 = vpop.f32.mrf.mxu1 }
 0x2bc   :  { %v643_v39 = vadd.f32 %v683_v36, %v642_v30 }
 0x2bd   :  { %v747_v37 = vpop.f32.mrf.mxu1 }
 0x2be   :  { %648 = vst [vmem:[#allocation2] sm:$0xff] %v643_v39 }
 0x2bf   :  { %v645_v41 = vpop.f32.mrf.mxu1 }
 0x2c0   :  { %806 = shalt.err (!%p803_p4)
}
 0x2c1   :  { %658 = dma.vmem_to_hbm [thread:$0]  %s656_s22, 128, %s978_s7, [#allocation3]   ;;  %v748_v42 = vpop.f32.mrf.mxu1 }
 0x2c2   :  { %815 = dma.done.wait [#allocation3], 128  }
 0x2c3   :  { %816 = vsyncadd [#allocation3], 4294967168 }
 0x2c4   :  { %662 = vsyncpa [#allocation3], 1 }

// kernel: tpu_custom_call.1
= control target key start
LH: loop header
LB: loop body
LE: loop exit
PB: predicated region body
PF: predicated region fallthrough
CT: control target
= control target key end

     0   :  { %vm72_vm0 = vcmask 261120   ;;  %s971_s0 = inlined_call_operand.vmem [shape: bf16[64,32], index: 0, kind: input, shape index: {}]   ;;  %s972_s1 = inlined_call_operand.vmem [shape: bf16[32,4], index: 1, kind: input, shape index: {}]   ;;  %s973_s2 = inlined_call_operand.vmem [shape: bf16[32,32], index: 2, kind: input, shape index: {}]   ;;  %s974_s3 = inlined_call_operand.vmem [shape: bf16[4,32], index: 3, kind: input, shape index: {}]   ;;  %s975_s4 = inlined_call_operand.vmem [shape: bf16[32,128], index: 4, kind: input, shape index: {}]   ;;  %s976_s5 = inlined_call_operand.vmem [shape: f32[1,128], index: 5, kind: input, shape index: {}]   ;;  %s977_s6 = inlined_call_operand.vmem [shape: f32[8,4], index: 6, kind: input, shape index: {}]   ;;  %s978_s7 = inlined_call_operand.hbm [shape: f32[8,128], index: 7, kind: output, shape index: {}]  }
   0x1   :  { %v753_v0 = vld [vmem:[%s972_s1 + $0x8] sm:$0xff]   ;;  %v754_v1 = vld [vmem:[%s972_s1] sm:$0xff]   ;;  %v757_v4 = vld [vmem:[%s971_s0 + $0x10] sm:$0xff]  }
   0x2   :  { %707 = vmatprep.subr.bf16.mxu0 %v753_v0  ;;  %v755_v2 = vld [vmem:[%s971_s0] sm:$0xff]   ;;  %v756_v3 = vld [vmem:[%s971_s0 + $0x8] sm:$0xff]  }
   0x3   :  { %708 = vmatpush3.bf16.msra.mxu0 %v753_v0  ;;  %711 = vmatprep.mubr.msk.bf16.mxu0 %vm72_vm0, %v755_v2 }
   0x4   :  { %709 = vmatprep.subr.bf16.mxu0 %v754_v1  ;;  %723 = vmatprep.mubr.msk.bf16.mxu1 %vm72_vm0, %v755_v2 }
   0x7   :  { %710 = vmatpush3.bf16.msra.mxu0 %v754_v1 }
   0x8   :  { %12 = vsyncpa [#allocation3], 0  ;;  %v758_v5 = vld [vmem:[%s971_s0 + $0x18] sm:$0xff]   ;;  %v759_v6 = vld [vmem:[%s973_s2 + $0x8] sm:$0xff]   ;;  %vm410_vm1 = vcmask 1041408   ;;  %vm159_vm2 = vcmask 31744  }
   0x9   :  { %719 = vmatprep.subr.bf16.mxu1 %v759_v6  ;;  %v760_v7 = vld [vmem:[%s973_s2] sm:$0xff]   ;;  %vm818_vm3 = vmmov 0   ;;  %vm578_vm4 = vcmask 1041409   ;;  %vm580_vm5 = vcmask 1042434   ;;  %vm582_vm6 = vcmask 1043459   ;;  %s819_s21 = smov [#allocation2]  }
   0xa   :  { %712 = vmatmul.mubr.msk.bf16.vlgmr.msra.gmra.mxu0 %vm72_vm0, %v756_v3  ;;  %720 = vmatpush3.bf16.msra.mxu1 %v759_v6  ;;  %v397_v8 = vld [vmem:[%s974_s3] sm:$0x3]  ;;  %vm584_vm7 = vcmask 1044484   ;;  %vm586_vm8 = vcmask 1045509   ;;  %vm588_vm9 = vcmask 1046534   ;;  %vm590_vm10 = vcmask 1047559  }
   0xb   :  { %715 = vmatprep.mubr.msk.bf16.mxu0 %vm72_vm0, %v757_v4  ;;  %721 = vmatprep.subr.bf16.mxu1 %v760_v7  ;;  %v412_v9 = vsel %vm410_vm1, %v397_v8, 0  ;;  %v150_v10 = vld [vmem:[%s977_s6] sm:$0xff]  ;;  %s655_s22 = sshll.u32 %s819_s21, 4  ;;  %s656_s22 = int_to_ptr.vmem [resolvable:$true] %s655_s22 }
   0xc   :  { %749 = vmatprep.subr.msk.bf16.mxu0 %vm410_vm1, %v397_v8  ;;  %s795_s23 = scalar_lea.vmem %s656_s22, 128  ;;  %p800_p1 = scmp.lt.s32.totalorder %s656_s22, %s656_s22 }
   0xd   :  { %732 = vmatpush3.bf16.msra.mxu0 %v412_v9  ;;  %p796_p0 = scmp.ne.s32.totalorder %s656_s22, %s795_s23  ;;  %p801_p2 = scmp.lt.s32.totalorder %s795_s23, %s795_s23 }
   0xe   :  { %722 = vmatpush3.bf16.msra.mxu1 %v760_v7 }
   0xf   :  { %p802_p3 = por %p801_p2, %p800_p1 }
  0x11   :  { %724 = vmatmul.mubr.msk.bf16.vlgmr.msra.gmra.mxu1 %vm72_vm0, %v756_v3  ;;  %p803_p4 = pnand %p802_p3, %p796_p0 }
  0x12   :  { %716 = vmatmul.mubr.msk.bf16.gmra.mxu0 %vm72_vm0, %v758_v5  ;;  %727 = vmatprep.mubr.msk.bf16.mxu1 %vm72_vm0, %v757_v4 }
  0x19   :  { %728 = vmatmul.mubr.msk.bf16.gmra.mxu1 %vm72_vm0, %v758_v5 }
  0xca   :  { %v713_v11 = vpop.f32.mrf.mxu0 }
  0xcb   :  { %v153_v12 = vadd.f32 %v713_v11, %v150_v10 }
  0xcc   :  { %v119_v13 = vpop.f32.mrf.mxu0 }
  0xcd   :  { %v174_v14 = vsel %vm159_vm2, %v153_v12, -inf  ;;  %v151_v15 = vadd.f32 %v150_v10, %v119_v13 }
  0xce   :  { %v175_v16 = vrot.slane %v174_v14, 4  ;;  %v714_v17 = vpop.f32.mrf.mxu0 }
  0xcf   :  { %v160_v18 = vsel %vm159_vm2, %v151_v15, -inf  ;;  %v154_v19 = vadd.f32 %v714_v17, %v150_v10 }
  0xd0   :  { %v176_v20 = vmax.f32 %v174_v14, %v175_v16  ;;  %v161_v21 = vrot.slane %v160_v18, 4  ;;  %v122_v22 = vpop.f32.mrf.mxu0 }
  0xd1   :  { %v181_v23 = vsel %vm159_vm2, %v154_v19, -inf  ;;  %v901_v24 = vadd.f32 %v150_v10, %v122_v22 }
  0xd2   :  { %v177_v25 = vrot.slane %v176_v20, 2  ;;  %v162_v26 = vmax.f32 %v160_v18, %v161_v21  ;;  %v182_v27 = vrot.slane %v181_v23, 4  ;;  %v717_v28 = vpop.f32.mrf.mxu0 }
  0xd3   :  { %v167_v29 = vsel %vm159_vm2, %v901_v24, -inf  ;;  %v905_v30 = vadd.f32 %v717_v28, %v150_v10 }
  0xd4   :  { %v178_v31 = vmax.f32 %v176_v20, %v177_v25  ;;  %v163_v32 = vrot.slane %v162_v26, 2  ;;  %v183_v33 = vmax.f32 %v181_v23, %v182_v27  ;;  %v168_v34 = vrot.slane %v167_v29, 4  ;;  %v135_v35 = vpop.f32.mrf.mxu0 }
  0xd5   :  { %v202_v36 = vsel %vm159_vm2, %v905_v30, -inf  ;;  %v155_v37 = vadd.f32 %v150_v10, %v135_v35 }
  0xd6   :  { %v179_v38 = vrot.slane %v178_v31, 1  ;;  %v164_v39 = vmax.f32 %v162_v26, %v163_v32  ;;  %v184_v40 = vrot.slane %v183_v33, 2  ;;  %v169_v41 = vmax.f32 %v167_v29, %v168_v34  ;;  %v718_v42 = vpop.f32.mrf.mxu0 }
  0xd7   :  { %v203_v43 = vrot.slane %v202_v36, 4  ;;  %v188_v44 = vsel %vm159_vm2, %v155_v37, -inf  ;;  %v158_v45 = vadd.f32 %v718_v42, %v150_v10 }
  0xd8   :  { %v180_v46 = vmax.f32 %v178_v31, %v179_v38  ;;  %v165_v47 = vrot.slane %v164_v39, 1  ;;  %v185_v48 = vmax.f32 %v183_v33, %v184_v40  ;;  %v170_v49 = vrot.slane %v169_v41, 2  ;;  %v138_v50 = vpop.f32.mrf.mxu0 }
  0xd9   :  { %v204_v51 = vmax.f32 %v202_v36, %v203_v43  ;;  %v189_v52 = vrot.slane %v188_v44, 4  ;;  %v209_v53 = vsel %vm159_vm2, %v158_v45, -inf  ;;  %v156_v54 = vadd.f32 %v150_v10, %v138_v50 }
  0xda   :  { %v218_v55 = vsub.f32 %v153_v12, %v180_v46  ;;  %v166_v56 = vmax.f32 %v164_v39, %v165_v47  ;;  %v186_v57 = vrot.slane %v185_v48, 1  ;;  %v171_v58 = vmax.f32 %v169_v41, %v170_v49 }
  0xdb   :  { %v205_v59 = vrot.slane %v204_v51, 2  ;;  %v190_v60 = vmax.f32 %v188_v44, %v189_v52  ;;  %v210_v61 = vrot.slane %v209_v53, 4  ;;  %v195_v62 = vsel %vm159_vm2, %v156_v54, -inf }
  0xdc   :  { %v228_v63 = vmul.f32 1.442695, %v218_v55  ;;  %v216_v0 = vsub.f32 %v151_v15, %v166_v56  ;;  %v187_v1 = vmax.f32 %v185_v48, %v186_v57  ;;  %v172_v2 = vrot.slane %v171_v58, 1 }
  0xdd   :  { %v206_v3 = vmax.f32 %v204_v51, %v205_v59  ;;  %v191_v4 = vrot.slane %v190_v60, 2  ;;  %v211_v5 = vmax.f32 %v209_v53, %v210_v61  ;;  %v196_v6 = vrot.slane %v195_v62, 4 }
  0xde   :  { %763 = vpow2.f32 %v228_v63  ;;  %v224_v7 = vmul.f32 1.442695, %v216_v0  ;;  %v219_v8 = vsub.f32 %v154_v19, %v187_v1  ;;  %v173_v9 = vmax.f32 %v171_v58, %v172_v2 }
  0xdf   :  { %v207_v10 = vrot.slane %v206_v3, 1  ;;  %v192_v11 = vmax.f32 %v190_v60, %v191_v4  ;;  %v212_v12 = vrot.slane %v211_v5, 2  ;;  %v197_v13 = vmax.f32 %v195_v62, %v196_v6 }
  0xe0   :  { %765 = vpow2.f32 %v224_v7  ;;  %v230_v14 = vmul.f32 1.442695, %v219_v8  ;;  %v217_v16 = vsub.f32 %v901_v24, %v173_v9 }
  0xe1   :  { %v208_v17 = vmax.f32 %v206_v3, %v207_v10  ;;  %v193_v15 = vrot.slane %v192_v11, 1  ;;  %v213_v18 = vmax.f32 %v211_v5, %v212_v12  ;;  %v198_v20 = vrot.slane %v197_v13, 2 }
  0xe2   :  { %767 = vpow2.f32 %v230_v14  ;;  %v226_v21 = vmul.f32 1.442695, %v217_v16 }
  0xe3   :  { %v222_v22 = vsub.f32 %v905_v30, %v208_v17  ;;  %v194_v23 = vmax.f32 %v192_v11, %v193_v15  ;;  %v214_v25 = vrot.slane %v213_v18, 1  ;;  %v199_v19 = vmax.f32 %v197_v13, %v198_v20 }
  0xe4   :  { %769 = vpow2.f32 %v226_v21 }
  0xe5   :  { %v236_v26 = vmul.f32 1.442695, %v222_v22  ;;  %v220_v27 = vsub.f32 %v155_v37, %v194_v23  ;;  %v215_v28 = vmax.f32 %v213_v18, %v214_v25  ;;  %v200_v29 = vrot.slane %v199_v19, 1 }
  0xe7   :  { %771 = vpow2.f32 %v236_v26  ;;  %v232_v31 = vmul.f32 1.442695, %v220_v27  ;;  %v223_v32 = vsub.f32 %v158_v45, %v215_v28  ;;  %v201_v24 = vmax.f32 %v199_v19, %v200_v29 }
  0xe9   :  { %773 = vpow2.f32 %v232_v31  ;;  %v238_v33 = vmul.f32 1.442695, %v223_v32  ;;  %v221_v34 = vsub.f32 %v156_v54, %v201_v24 }
  0xeb   :  { %v914_v35 = vpop.eup %763  ;;  %775 = vpow2.f32 %v238_v33  ;;  %v234_v36 = vmul.f32 1.442695, %v221_v34 }
  0xec   :  { %v254_v30 = vsel %vm159_vm2, %v914_v35, 0.0 }
  0xed   :  { %v918_v38 = vpop.eup %765  ;;  %v255_v39 = vrot.slane %v254_v30, 4  ;;  %777 = vpow2.f32 %v234_v36 }
  0xee   :  { %v240_v37 = vsel %vm159_vm2, %v918_v38, 0.0 }
  0xef   :  { %v922_v40 = vpop.eup %767  ;;  %v256_v41 = vadd.f32 %v255_v39, %v254_v30  ;;  %v241_v42 = vrot.slane %v240_v37, 4 }
  0xf0   :  { %v261_v43 = vsel %vm159_vm2, %v922_v40, 0.0 }
  0xf1   :  { %v926_v44 = vpop.eup %769  ;;  %v257_v45 = vrot.slane %v256_v41, 2  ;;  %v242_v46 = vadd.f32 %v241_v42, %v240_v37  ;;  %v262_v47 = vrot.slane %v261_v43, 4 }
  0xf2   :  { %v247_v48 = vsel %vm159_vm2, %v926_v44, 0.0 }
  0xf3   :  { %v258_v49 = vadd.f32 %v257_v45, %v256_v41  ;;  %v243_v50 = vrot.slane %v242_v46, 2  ;;  %v263_v51 = vadd.f32 %v262_v47, %v261_v43  ;;  %v248_v52 = vrot.slane %v247_v48, 4 }
  0xf4   :  { %v930_v53 = vpop.eup %771 }
  0xf5   :  { %v244_v54 = vadd.f32 %v243_v50, %v242_v46  ;;  %v264_v55 = vrot.slane %v263_v51, 2  ;;  %v249_v56 = vadd.f32 %v248_v52, %v247_v48  ;;  %v259_v58 = vrot.slane %v258_v49, 1 }
  0xf6   :  { %v932_v57 = vpop.eup %773  ;;  %v282_v59 = vsel %vm159_vm2, %v930_v53, 0.0 }
  0xf7   :  { %v245_v60 = vrot.slane %v244_v54, 1  ;;  %v265_v61 = vadd.f32 %v264_v55, %v263_v51  ;;  %v250_v62 = vrot.slane %v249_v56, 2  ;;  %v283_v0 = vrot.slane %v282_v59, 4 }
  0xf8   :  { %v776_v63 = vpop.eup %775  ;;  %v268_v1 = vsel %vm159_vm2, %v932_v57, 0.0  ;;  %v260_v6 = vadd.f32 %v259_v58, %v258_v49  ;;  %v817_v58 = vmov 0.0  }
  0xf9   :  { %v246_v2 = vadd.f32 %v245_v60, %v244_v54  ;;  %v266_v3 = vrot.slane %v265_v61, 1  ;;  %v251_v4 = vadd.f32 %v250_v62, %v249_v56  ;;  %v284_v7 = vadd.f32 %v283_v0, %v282_v59  ;;  %741 = vmatprep.subr.bf16.mxu1 %v817_v58  ;;  %745 = vmatprep.mubr.msk.bf16.mxu1 %vm818_vm3, %v817_v58 }
  0xfa   :  { %v778_v5 = vpop.eup %777  ;;  %v269_v8 = vrot.slane %v268_v1, 4  ;;  %v289_v9 = vsel %vm159_vm2, %v776_v63, 0.0 }
  0xfb   :  { %v267_v10 = vadd.f32 %v266_v3, %v265_v61  ;;  %v252_v11 = vrot.slane %v251_v4, 1  ;;  %v290_v12 = vrot.slane %v289_v9, 4  ;;  %779 = vrcp.f32 %v246_v2 }
  0xfc   :  { %v285_v13 = vrot.slane %v284_v7, 2  ;;  %v270_v14 = vadd.f32 %v269_v8, %v268_v1  ;;  %v275_v16 = vsel %vm159_vm2, %v778_v5, 0.0 }
  0xfd   :  { %781 = vrcp.f32 %v267_v10  ;;  %v253_v17 = vadd.f32 %v252_v11, %v251_v4  ;;  %v291_v15 = vadd.f32 %v290_v12, %v289_v9  ;;  %v276_v18 = vrot.slane %v275_v16, 4 }
  0xfe   :  { %783 = vrcp.f32 %v260_v6  ;;  %v286_v20 = vadd.f32 %v285_v13, %v284_v7  ;;  %v271_v21 = vrot.slane %v270_v14, 2 }
  0xff   :  { %785 = vrcp.f32 %v253_v17  ;;  %v292_v22 = vrot.slane %v291_v15, 2  ;;  %v277_v23 = vadd.f32 %v276_v18, %v275_v16 }
 0x100   :  { %v287_v25 = vrot.slane %v286_v20, 1  ;;  %v272_v19 = vadd.f32 %v271_v21, %v270_v14 }
 0x101   :  { %v293_v26 = vadd.f32 %v292_v22, %v291_v15  ;;  %v278_v27 = vrot.slane %v277_v23, 2 }
 0x102   :  { %v273_v28 = vrot.slane %v272_v19, 1  ;;  %v288_v32 = vadd.f32 %v287_v25, %v286_v20 }
 0x103   :  { %v294_v29 = vrot.slane %v293_v26, 1  ;;  %v279_v31 = vadd.f32 %v278_v27, %v277_v23 }
 0x104   :  { %v274_v24 = vadd.f32 %v273_v28, %v272_v19 }
 0x105   :  { %v295_v33 = vadd.f32 %v294_v29, %v293_v26  ;;  %v280_v34 = vrot.slane %v279_v31, 1 }
 0x106   :  { %787 = vrcp.f32 %v274_v24 }
 0x107   :  { %789 = vrcp.f32 %v295_v33  ;;  %v281_v36 = vadd.f32 %v280_v34, %v279_v31 }
 0x108   :  { %791 = vrcp.f32 %v288_v32  ;;  %v780_v30 = vpop.eup %779 }
 0x109   :  { %793 = vrcp.f32 %v281_v36  ;;  %v304_v43 = vmul.f32 %v780_v30, %v918_v38 }
 0x10a   :  { %v782_v39 = vpop.eup %781 }
 0x10b   :  { %v784_v37 = vpop.eup %783  ;;  %v307_v42 = vmul.f32 %v782_v39, %v922_v40 }
 0x10c   :  { %v786_v41 = vpop.eup %785  ;;  %v306_v46 = vmul.f32 %v784_v37, %v914_v35  ;;  %v761_v35 = vld [vmem:[%s975_s4 + $0x8] sm:$0xff]  }
 0x10d   :  { %v305_v45 = vmul.f32 %v786_v41, %v926_v44  ;;  %742 = vmatpush3.bf16.msra.mxu1 %v761_v35 }
 0x10e   :  { %v394_v48 = vpack.c.bf16 %v307_v42, %v306_v46  ;;  %743 = vmatprep.subr.bf16.mxu1 %v817_v58 }
 0x10f   :  { %v393_v47 = vpack.c.bf16 %v305_v45, %v304_v43 }
 0x111   :  { %733 = vmatprep.mubr.msk.bf16.mxu0 %vm159_vm2, %v393_v47 }
 0x112   :  { %734 = vmatmul.mubr.msk.bf16.vlgmr.msra.gmra.mxu0 %vm159_vm2, %v394_v48 }
 0x113   :  { %v788_v49 = vpop.eup %787 }
 0x114   :  { %v790_v50 = vpop.eup %789  ;;  %v308_v55 = vmul.f32 %v788_v49, %v932_v57  ;;  %v762_v57 = vld [vmem:[%s975_s4] sm:$0xff]  }
 0x115   :  { %v792_v51 = vpop.eup %791  ;;  %v311_v54 = vmul.f32 %v790_v50, %v776_v63  ;;  %744 = vmatpush3.bf16.msra.mxu1 %v762_v57 }
 0x116   :  { %v794_v52 = vpop.eup %793  ;;  %v310_v38 = vmul.f32 %v792_v51, %v930_v53  ;;  %v725_v53 = vpop.f32.mrf.mxu1 }
 0x117   :  { %v309_v40 = vmul.f32 %v794_v52, %v778_v5 }
 0x118   :  { %v396_v44 = vpack.c.bf16 %v311_v54, %v310_v38  ;;  %v362_v59 = vpop.f32.mrf.mxu1 }
 0x119   :  { %v395_v56 = vpack.c.bf16 %v309_v40, %v308_v55 }
 0x11a   :  { %v726_v60 = vpop.f32.mrf.mxu1 }
 0x11b   :  { %737 = vmatprep.mubr.msk.bf16.mxu0 %vm159_vm2, %v395_v56 }
 0x11c   :  { %738 = vmatmul.mubr.msk.bf16.gmra.mxu0 %vm159_vm2, %v396_v44  ;;  %v365_v61 = vpop.f32.mrf.mxu1 }
 0x11e   :  { %v729_v4 = vpop.f32.mrf.mxu1 }
 0x120   :  { %v378_v16 = vpop.f32.mrf.mxu1 }
 0x122   :  { %v730_v27 = vpop.f32.mrf.mxu1 }
 0x124   :  { %v381_v45 = vpop.f32.mrf.mxu1 }
 0x1d2   :  { %v735_v62 = vpop.f32.mrf.mxu0 }
 0x1d3   :  { %v481_v63 = vmul.f32 %v735_v62, %v725_v53 }
 0x1d4   :  { %v448_v0 = vpop.f32.mrf.mxu0 }
 0x1d5   :  { %v501_v1 = vsel %vm72_vm0, %v481_v63, 0.0  ;;  %v479_v2 = vmul.f32 %v448_v0, %v362_v59 }
 0x1d6   :  { %v502_v3 = vrot.slane %v501_v1, 4  ;;  %v736_v5 = vpop.f32.mrf.mxu0 }
 0x1d7   :  { %v487_v6 = vsel %vm72_vm0, %v479_v2, 0.0  ;;  %v482_v7 = vmul.f32 %v736_v5, %v726_v60 }
 0x1d8   :  { %v503_v8 = vadd.f32 %v502_v3, %v501_v1  ;;  %v488_v9 = vrot.slane %v487_v6, 4  ;;  %v451_v10 = vpop.f32.mrf.mxu0 }
 0x1d9   :  { %v508_v11 = vsel %vm72_vm0, %v482_v7, 0.0  ;;  %v480_v12 = vmul.f32 %v451_v10, %v365_v61 }
 0x1da   :  { %v504_v13 = vrot.slane %v503_v8, 2  ;;  %v489_v14 = vadd.f32 %v488_v9, %v487_v6  ;;  %v509_v17 = vrot.slane %v508_v11, 4 }
 0x1db   :  { %v494_v15 = vsel %vm72_vm0, %v480_v12, 0.0 }
 0x1dc   :  { %v505_v18 = vadd.f32 %v504_v13, %v503_v8  ;;  %v490_v20 = vrot.slane %v489_v14, 2  ;;  %v510_v21 = vadd.f32 %v509_v17, %v508_v11  ;;  %v495_v22 = vrot.slane %v494_v15, 4  ;;  %v739_v23 = vpop.f32.mrf.mxu0 }
 0x1dd   :  { %v485_v25 = vmul.f32 %v739_v23, %v729_v4 }
 0x1de   :  { %v491_v19 = vadd.f32 %v490_v20, %v489_v14  ;;  %v511_v26 = vrot.slane %v510_v21, 2  ;;  %v496_v28 = vadd.f32 %v495_v22, %v494_v15  ;;  %v464_v29 = vpop.f32.mrf.mxu0  ;;  %v506_v24 = vrot.slane %v505_v18, 1 }
 0x1df   :  { %v529_v31 = vsel %vm72_vm0, %v485_v25, 0.0  ;;  %v483_v32 = vmul.f32 %v464_v29, %v378_v16 }
 0x1e0   :  { %v492_v33 = vrot.slane %v491_v19, 1  ;;  %v512_v34 = vadd.f32 %v511_v26, %v510_v21  ;;  %v497_v36 = vrot.slane %v496_v28, 2  ;;  %v740_v30 = vpop.f32.mrf.mxu0  ;;  %v530_v39 = vrot.slane %v529_v31, 4 }
 0x1e1   :  { %v515_v37 = vsel %vm72_vm0, %v483_v32, 0.0  ;;  %v486_v41 = vmul.f32 %v740_v30, %v730_v27  ;;  %v507_v51 = vadd.f32 %v506_v24, %v505_v18 }
 0x1e2   :  { %v493_v42 = vadd.f32 %v492_v33, %v491_v19  ;;  %v498_v43 = vadd.f32 %v497_v36, %v496_v28  ;;  %v467_v46 = vpop.f32.mrf.mxu0  ;;  %v531_v47 = vadd.f32 %v530_v39, %v529_v31  ;;  %v516_v48 = vrot.slane %v515_v37, 4  ;;  %v683_v36 = vld [vmem:[%s976_s5] ss:$0 sm:$0xff] }
 0x1e3   :  { %v536_v49 = vsel %vm72_vm0, %v486_v41, 0.0  ;;  %v484_v50 = vmul.f32 %v467_v46, %v381_v45  ;;  %v513_v52 = vrot.slane %v512_v34, 1  ;;  %v545_v63 = vpack.c.bf16 %v507_v51, %v507_v51 }
 0x1e4   :  { %v499_v54 = vrot.slane %v498_v43, 1  ;;  %v532_v55 = vrot.slane %v531_v47, 2  ;;  %v517_v40 = vadd.f32 %v516_v48, %v515_v37  ;;  %v537_v38 = vrot.slane %v536_v49, 4 }
 0x1e5   :  { %v522_v56 = vsel %vm72_vm0, %v484_v50, 0.0  ;;  %v543_v44 = vpack.c.bf16 %v493_v42, %v493_v42  ;;  %v514_v60 = vadd.f32 %v513_v52, %v512_v34  ;;  %v572_v11 = vunpack.c.l.b16 %v545_v63 }
 0x1e6   :  { %v500_v35 = vadd.f32 %v499_v54, %v498_v43  ;;  %v523_v58 = vrot.slane %v522_v56, 4  ;;  %v533_v57 = vadd.f32 %v532_v55, %v531_v47  ;;  %v518_v53 = vrot.slane %v517_v40, 2 }
 0x1e7   :  { %v538_v59 = vadd.f32 %v537_v38, %v536_v49  ;;  %v570_v3 = vunpack.c.l.b16 %v543_v44  ;;  %v546_v8 = vpack.c.bf16 %v514_v60, %v514_v60 }
 0x1e8   :  { %v544_v61 = vpack.c.bf16 %v500_v35, %v500_v35  ;;  %v524_v62 = vadd.f32 %v523_v58, %v522_v56  ;;  %v534_v0 = vrot.slane %v533_v57, 1  ;;  %v519_v1 = vadd.f32 %v518_v53, %v517_v40 }
 0x1e9   :  { %v539_v2 = vrot.slane %v538_v59, 2  ;;  %v573_v20 = vunpack.c.l.b16 %v546_v8 }
 0x1ea   :  { %v571_v4 = vunpack.c.l.b16 %v544_v61  ;;  %v525_v5 = vrot.slane %v524_v62, 2  ;;  %v520_v6 = vrot.slane %v519_v1, 1  ;;  %v535_v12 = vadd.f32 %v534_v0, %v533_v57 }
 0x1eb   :  { %v540_v7 = vadd.f32 %v539_v2, %v538_v59 }
 0x1ec   :  { %v579_v9 = vsel %vm578_vm4, %v571_v4, %v570_v3  ;;  %v526_v10 = vadd.f32 %v525_v5, %v524_v62  ;;  %v521_v13 = vadd.f32 %v520_v6, %v519_v1  ;;  %v549_v22 = vpack.c.bf16 %v535_v12, %v535_v12 }
 0x1ed   :  { %v541_v14 = vrot.slane %v540_v7, 1  ;;  %v581_v17 = vsel %vm580_vm5, %v572_v11, %v579_v9 }
 0x1ee   :  { %v527_v16 = vrot.slane %v526_v10, 1  ;;  %v547_v15 = vpack.c.bf16 %v521_v13, %v521_v13  ;;  %v583_v25 = vsel %vm582_vm6, %v573_v20, %v581_v17  ;;  %v576_v28 = vunpack.c.l.b16 %v549_v22 }
 0x1ef   :  { %v542_v18 = vadd.f32 %v541_v14, %v540_v7 }
 0x1f0   :  { %v528_v21 = vadd.f32 %v527_v16, %v526_v10  ;;  %v574_v23 = vunpack.c.l.b16 %v547_v15 }
 0x1f1   :  { %v550_v19 = vpack.c.bf16 %v542_v18, %v542_v18 }
 0x1f2   :  { %v548_v26 = vpack.c.bf16 %v528_v21, %v528_v21  ;;  %v585_v29 = vsel %vm584_vm7, %v574_v23, %v583_v25 }
 0x1f3   :  { %v577_v31 = vunpack.c.l.b16 %v550_v19 }
 0x1f4   :  { %v575_v27 = vunpack.c.l.b16 %v548_v26 }
 0x1f6   :  { %v587_v32 = vsel %vm586_vm8, %v575_v27, %v585_v29 }
 0x1f7   :  { %v589_v24 = vsel %vm588_vm9, %v576_v28, %v587_v32 }
 0x1f8   :  { %v591_v33 = vsel %vm590_vm10, %v577_v31, %v589_v24 }
 0x1f9   :  { %v592_v34 = vpack.c.b16 %v591_v33, %v591_v33 }
 0x1fb   :  { %746 = vmatmul.mubr.msk.bf16.vlgmr.msra.gmra.mxu1 %vm72_vm0, %v592_v34 }
 0x2bb   :  { %v642_v30 = vpop.f32.mrf.mxu1 }
 0x2bc   :  { %v643_v39 = vadd.f32 %v683_v36, %v642_v30 }
 0x2bd   :  { %v747_v37 = vpop.f32.mrf.mxu1 }
 0x2be   :  { %648 = vst [vmem:[#allocation2] sm:$0xff] %v643_v39 }
 0x2bf   :  { %v645_v41 = vpop.f32.mrf.mxu1 }
 0x2c0   :  { %806 = shalt.err (!%p803_p4)
}
 0x2c1   :  { %658 = dma.vmem_to_hbm [thread:$0]  %s656_s22, 128, %s978_s7, [#allocation3]   ;;  %v748_v42 = vpop.f32.mrf.mxu1 }
 0x2c2   :  { %815 = dma.done.wait [#allocation3], 128  }
 0x2c3   :  { %816 = vsyncadd [#allocation3], 4294967168 }
 0x2c4   :  { %662 = vsyncpa [#allocation3], 1 }

</bundles_post_ra>
